<compile_context>
chip_gen: v6e
topology: v6e:2x2x1
jax: 0.10.0
libtpu: 0.0.40
codegen_flags: <defaults>
</compile_context>

<pallas_src>
import math

import jax
import jax.numpy as jnp
from jax.experimental import pallas as pl
from jax.experimental.pallas import tpu as pltpu


# ---------------------------------------------------------------------------
# Kernels (pure streaming elementwise; HBM-bandwidth bound on every TPU gen)
# ---------------------------------------------------------------------------

def _pe_add_kernel_3d(x_ref, pe_ref, o_ref):
    # x_ref/o_ref: (tS, tB, D);  pe_ref: (tS, D) broadcast over batch in-kernel.
    o_ref[...] = (x_ref[...] + pe_ref[...][:, None, :]).astype(o_ref.dtype)


def _pe_add_drop_kernel_3d(x_ref, pe_ref, m_ref, o_ref):
    # m_ref holds the pre-scaled keep mask (0 or 1/(1-p)).
    enc = x_ref[...] + pe_ref[...][:, None, :]
    o_ref[...] = (enc * m_ref[...]).astype(o_ref.dtype)


def _pe_add_kernel_2d(x_ref, pe_ref, o_ref):
    # Lane-dense folded tiles (tS, tC); pe is the pre-tiled cached table.
    o_ref[...] = (x_ref[...] + pe_ref[...]).astype(o_ref.dtype)


def _pe_add_drop_kernel_2d(x_ref, pe_ref, m_ref, o_ref):
    o_ref[...] = ((x_ref[...] + pe_ref[...]) * m_ref[...]).astype(o_ref.dtype)


# ---------------------------------------------------------------------------
# Tiling helpers
# ---------------------------------------------------------------------------

_TARGET_BLOCK_BYTES = 4 << 20   # ~4 MiB/block: amortizes per-step overhead on v7x


def _choose_tile_rows(S, row_bytes, target_bytes=_TARGET_BLOCK_BYTES):
    """Largest multiple-of-8 row count under the byte target, while keeping the
    grid >= 2 (ideally >= 4) steps so v7x's two TensorCores and the DMA/compute
    pipeline are actually used."""
    rows = max(1, target_bytes // max(1, row_bytes))
    if S >= 32:
        rows = min(rows, S // 4)
    elif S >= 16:
        rows = min(rows, S // 2)
    if rows >= S:
        return S
    rows = max(8, (rows // 8) * 8)
    return min(rows, S)


def _choose_tile_cols(C, itemsize, target_bytes=_TARGET_BLOCK_BYTES):
    """Folded-path lane tiling: full width unless an 8-row block would blow the
    byte budget; otherwise largest multiple of 128 that fits."""
    if 8 * C * itemsize <= target_bytes:
        return C
    cols = max(128, ((target_bytes // (8 * itemsize)) // 128) * 128)
    return min(cols, C)


def _choose_tile_batch(B, D, itemsize, target_bytes=_TARGET_BLOCK_BYTES):
    """3-D-path batch tiling: keeps (8, tB, D) blocks bounded for very wide B*D
    (important on v7x: 64 MiB physical VMEM)."""
    if 8 * B * D * itemsize <= target_bytes:
        return B
    tb = max(8, ((target_bytes // (8 * D * itemsize)) // 8) * 8)
    return min(tb, B)


def _vmem_limit(block_bytes_list):
    """Double-buffered streams + headroom; never clamps below the requirement."""
    need = 2 * sum(block_bytes_list) + (2 << 20)
    return int(min(max(16 << 20, need), 128 << 20))


# ---------------------------------------------------------------------------
# Forward paths
# ---------------------------------------------------------------------------

def _forward_3d(x, pe_table, mask):
    """D % 128 == 0: stream pe only once per S-tile (no batch duplication)."""
    S, B, D = x.shape
    itemsize = jnp.dtype(x.dtype).itemsize
    pe = pe_table[:S].astype(x.dtype)                       # tiny [S, D] cast

    tB = _choose_tile_batch(B, D, itemsize)
    tS = _choose_tile_rows(S, tB * D * itemsize)
    grid = (pl.cdiv(S, tS), pl.cdiv(B, tB))

    x_spec = pl.BlockSpec((tS, tB, D), lambda i, j: (i, j, 0))
    pe_spec = pl.BlockSpec((tS, D), lambda i, j: (i, 0))     # same block across j -> DMA skipped
    out_spec = pl.BlockSpec((tS, tB, D), lambda i, j: (i, j, 0))

    xblk = tS * tB * D * itemsize
    peblk = tS * D * itemsize
    blocks = [xblk, peblk, xblk] + ([xblk] if mask is not None else [])

    cparams = pltpu.CompilerParams(
        dimension_semantics=("parallel", "parallel"),
        vmem_limit_bytes=_vmem_limit(blocks),
    )
    out_shape = jax.ShapeDtypeStruct((S, B, D), x.dtype)

    if mask is None:
        return pl.pallas_call(
            _pe_add_kernel_3d,
            out_shape=out_shape,
            grid=grid,
            in_specs=[x_spec, pe_spec],
            out_specs=out_spec,
            compiler_params=cparams,
        )(x, pe)

    return pl.pallas_call(
        _pe_add_drop_kernel_3d,
        out_shape=out_shape,
        grid=grid,
        in_specs=[x_spec, pe_spec, x_spec],
        out_specs=out_spec,
        compiler_params=cparams,
    )(x, pe, mask)


def _forward_folded(x, pe2, mask):
    """D < 128 (or not a multiple of 128): lane-dense folded [S, B*D] layout;
    pe2 is the cached pre-tiled table (built once at setup, not per call)."""
    S, B, D = x.shape
    C = B * D
    itemsize = jnp.dtype(x.dtype).itemsize

    x2 = x.reshape(S, C)
    m2 = mask.reshape(S, C) if mask is not None else None

    tC = _choose_tile_cols(C, itemsize)
    tS = _choose_tile_rows(S, tC * itemsize)
    grid = (pl.cdiv(S, tS), pl.cdiv(C, tC))

    spec = pl.BlockSpec((tS, tC), lambda i, j: (i, j))
    blk = tS * tC * itemsize
    blocks = [blk, blk, blk] + ([blk] if mask is not None else [])

    cparams = pltpu.CompilerParams(
        dimension_semantics=("parallel", "parallel"),
        vmem_limit_bytes=_vmem_limit(blocks),
    )
    out_shape = jax.ShapeDtypeStruct((S, C), x.dtype)

    if mask is None:
        out2 = pl.pallas_call(
            _pe_add_kernel_2d,
            out_shape=out_shape,
            grid=grid,
            in_specs=[spec, spec],
            out_specs=spec,
            compiler_params=cparams,
        )(x2, pe2)
    else:
        out2 = pl.pallas_call(
            _pe_add_drop_kernel_2d,
            out_shape=out_shape,
            grid=grid,
            in_specs=[spec, spec, spec],
            out_specs=spec,
            compiler_params=cparams,
        )(x2, pe2, m2)
    return out2.reshape(S, B, D)


# ---------------------------------------------------------------------------
# Module (mirrors the torch nn.Module: setup once, forward many times)
# ---------------------------------------------------------------------------

def _make_pe_table(d_model, max_len, scale_factor, dtype):
    """Sinusoidal table, shape [max_len, d_model] (torch buffer minus its
    size-1 batch axis)."""
    position = jnp.arange(0, max_len, dtype=jnp.float32)[:, None]            # [L, 1]
    div_term = jnp.exp(jnp.arange(0, d_model, 2, dtype=jnp.float32)
                       * (-math.log(10000.0) / d_model))                     # [D/2]
    pe = jnp.zeros((max_len, d_model), dtype=jnp.float32)
    pe = pe.at[:, 0::2].set(jnp.sin(position * div_term))
    pe = pe.at[:, 1::2].set(jnp.cos(position * div_term))
    return (scale_factor * pe).astype(dtype)                                 # [L, D]


class FixedPositionalEncoding:
    """JAX/Pallas analogue of the torch module.  pe is a buffer computed at
    __init__; the folded (D<128) per-batch tiled table is cached so it is
    built once, not re-materialized in HBM on every forward call."""

    def __init__(self, d_model, dropout=0.1, max_len=1024, scale_factor=1.0,
                 dtype=jnp.float32):
        self.d_model = int(d_model)
        self.dropout_p = float(dropout)
        self.max_len = int(max_len)
        self.pe = _make_pe_table(d_model, max_len, scale_factor, dtype)       # [L, D]
        self._pe_folded_cache = {}                                            # (S,B,dtype) -> [S, B*D]

    def _folded_pe(self, S, B, dtype):
        key = (S, B, jnp.dtype(dtype).name)
        if key not in self._pe_folded_cache:
            pe = self.pe[:S].astype(dtype)                                    # [S, D]
            self._pe_folded_cache[key] = jnp.broadcast_to(
                pe[:, None, :], (S, B, self.d_model)
            ).reshape(S, B * self.d_model)
        return self._pe_folded_cache[key]

    def __call__(self, x, *, training=False, rng=None):
        """x: [S, B, D] with S <= max_len (torch's valid case is S == max_len)."""
        S, B, D = x.shape
        assert D == self.d_model, "embed dim mismatch"
        assert S <= self.max_len, "need S <= max_len (torch requires S == max_len)"

        mask = None
        if training and self.dropout_p > 0.0:
            if rng is None:
                rng = jax.random.PRNGKey(0)
            keep = jax.random.bernoulli(rng, 1.0 - self.dropout_p, (S, B, D))
            mask = jnp.where(keep, 1.0 / (1.0 - self.dropout_p), 0.0).astype(x.dtype)

        if D % 128 == 0:
            return _forward_3d(x, self.pe, mask)
        pe2 = self._folded_pe(S, B, x.dtype)
        return _forward_folded(x, pe2, mask)


# ---------------------------------------------------------------------------
# Self-test
# ---------------------------------------------------------------------------

if __name__ == "__main__":
    key = jax.random.PRNGKey(0)
    k1, k2, k3 = jax.random.split(key, 3)

    # --- Folded path (D < 128): S == max_len, matches the torch broadcast. --
    S, B, D = 8, 2, 32
    mod = FixedPositionalEncoding(d_model=D, dropout=0.1, max_len=S, scale_factor=1.0)
    x = jax.random.normal(k1, (S, B, D), dtype=jnp.float32)

    out = jax.block_until_ready(mod(x, training=False))          # eval: dropout = identity
    ref = x + mod.pe[:S, None, :]
    assert out.shape == (S, B, D)
    assert jnp.allclose(out, ref, atol=1e-6), "eval (folded) mismatch vs reference"

    p = mod.dropout_p
    out_tr = jax.block_until_ready(mod(x, training=True, rng=k2))  # train: dropout active
    assert out_tr.shape == (S, B, D)
    ok = jnp.isclose(out_tr, 0.0, atol=1e-6) | jnp.isclose(out_tr, ref / (1.0 - p),
                                                           atol=1e-5, rtol=1e-5)
    assert bool(jnp.all(ok)), "train output not in {0, enc/(1-p)}"

    # --- 3-D path (D % 128 == 0): pe streamed once, broadcast in-kernel. ----
    S2, B2, D2 = 16, 2, 128
    mod2 = FixedPositionalEncoding(d_model=D2, dropout=0.1, max_len=S2, scale_factor=1.0)
    xw = jax.random.normal(k3, (S2, B2, D2), dtype=jnp.float32)
    outw = jax.block_until_ready(mod2(xw, training=False))
    refw = xw + mod2.pe[:S2, None, :]
    assert outw.shape == (S2, B2, D2)
    assert jnp.allclose(outw, refw, atol=1e-6), "eval (3-D) mismatch vs reference"

    print("KERNEL_OK")
</pallas_src>

<mosaic_0001>
module attributes {stable_mosaic.version = 11 : i64} {
  func.func @_pe_add_kernel_2d(%arg0: i32, %arg1: i32, %arg2: memref<8x64xf32, #tpu.memory_space<vmem>>, %arg3: memref<8x64xf32, #tpu.memory_space<vmem>>, %arg4: memref<8x64xf32, #tpu.memory_space<vmem>>) attributes {dimension_semantics = [#tpu.dimension_semantics<parallel>, #tpu.dimension_semantics<parallel>], iteration_bounds = array<i64: 1, 1>, scalar_prefetch = 0 : i64, scratch_operands = 0 : i64, tpu.core_type = #tpu.core_type<tc>, window_params = [{transform_indices = @transform_0, window_bounds = array<i64: 8, 64>}, {transform_indices = @transform_1, window_bounds = array<i64: 8, 64>}, {transform_indices = @transform_2, window_bounds = array<i64: 8, 64>}]} {
    %c0 = arith.constant 0 : index
    %c0_0 = arith.constant 0 : index
    %0 = vector.load %arg2[%c0, %c0_0] : memref<8x64xf32, #tpu.memory_space<vmem>>, vector<8x64xf32>
    %c0_1 = arith.constant 0 : index
    %c0_2 = arith.constant 0 : index
    %1 = vector.load %arg3[%c0_1, %c0_2] : memref<8x64xf32, #tpu.memory_space<vmem>>, vector<8x64xf32>
    %2 = arith.addf %0, %1 : vector<8x64xf32>
    %c0_3 = arith.constant 0 : index
    %c0_4 = arith.constant 0 : index
    %3 = vector.load %arg4[%c0_3, %c0_4] : memref<8x64xf32, #tpu.memory_space<vmem>>, vector<8x64xf32>
    tpu.vector_store %arg4[%c0_3, %c0_4], %2 {strides = array<i32>} : memref<8x64xf32, #tpu.memory_space<vmem>>, vector<8x64xf32>,
    return
  }
  func.func @transform_0(%arg0: i32, %arg1: i32) -> (i32, i32) {
    %c0_i32 = arith.constant 0 : i32
    return %arg0, %arg1 : i32, i32
  }
  func.func @transform_1(%arg0: i32, %arg1: i32) -> (i32, i32) {
    %c0_i32 = arith.constant 0 : i32
    return %arg0, %arg1 : i32, i32
  }
  func.func @transform_2(%arg0: i32, %arg1: i32) -> (i32, i32) {
    %c0_i32 = arith.constant 0 : i32
    return %arg0, %arg1 : i32, i32
  }
}

</mosaic_0001>

<bundles_post_ra>
// kernel: tpu_custom_call.1
= control target key start
LH: loop header
LB: loop body
LE: loop exit
PB: predicated region body
PF: predicated region fallthrough
CT: control target
= control target key end

     0   :  { %7 = vsyncpa [#allocation3], 0  ;;  %s153_s0 = inlined_call_operand.hbm [shape: f32[8,64], index: 0, kind: input, shape index: {}]   ;;  %s154_s1 = inlined_call_operand.hbm [shape: f32[8,64], index: 1, kind: input, shape index: {}]   ;;  %s155_s2 = inlined_call_operand.hbm [shape: f32[8,64], index: 2, kind: output, shape index: {}]  }
   0x1   :  { %8 = vsyncpa [#allocation6], 0 }
   0x2   :  { %9 = vsyncpa [#allocation4], 0  ;;  %s126_s9 = smov [#allocation2]   ;;  %s127_s11 = smov [#allocation5]  }
   0x3   :  { %s16_s10 = sshll.u32 %s126_s9, 4  ;;  %s26_s12 = sshll.u32 %s127_s11, 4  ;;  %s17_s10 = int_to_ptr.vmem [resolvable:$true] %s16_s10  ;;  %s27_s12 = int_to_ptr.vmem [resolvable:$true] %s26_s12 }
   0x4   :  { %s68_s13 = scalar_lea.vmem %s17_s10, 128  ;;  %p73_p1 = scmp.lt.s32.totalorder %s17_s10, %s17_s10 }
   0x5   :  { %p69_p0 = scmp.ne.s32.totalorder %s17_s10, %s68_s13  ;;  %p74_p2 = scmp.lt.s32.totalorder %s68_s13, %s68_s13 }
   0x7   :  { %p75_p3 = por %p74_p2, %p73_p1 }
   0x9   :  { %p76_p4 = pnand %p75_p3, %p69_p0 }
   0xb   :  { %79 = shalt.err (!%p76_p4)
}
   0xc   :  { %19 = dma.hbm_to_vmem [thread:$0]  %s153_s0, 128, %s17_s10, [#allocation3]  }
   0xd   :  { %s88_s16 = scalar_lea.vmem %s27_s12, 128  ;;  %p93_p6 = scmp.lt.s32.totalorder %s27_s12, %s27_s12 }
   0xe   :  { %p89_p5 = scmp.ne.s32.totalorder %s27_s12, %s88_s16  ;;  %p94_p7 = scmp.lt.s32.totalorder %s88_s16, %s88_s16 }
  0x10   :  { %p95_p8 = por %p94_p7, %p93_p6 }
  0x12   :  { %p96_p9 = pnand %p95_p8, %p89_p5 }
  0x14   :  { %99 = shalt.err (!%p96_p9)
}
  0x15   :  { %29 = dma.hbm_to_vmem [thread:$0]  %s154_s1, 128, %s27_s12, [#allocation6]  }
  0x16   :  { %120 = dma.done.wait [#allocation3], 128  }
  0x17   :  { %121 = vsyncadd [#allocation3], 4294967168 }
  0x18   :  { %122 = dma.done.wait [#allocation6], 128  }
  0x19   :  { %123 = vsyncadd [#allocation6], 4294967168  ;;  %s128_s19 = smov [#allocation7]   ;;  %v36_v0 = vld [vmem:[#allocation2] sm:$0xff]  ;;  %v37_v1 = vld [vmem:[#allocation5] sm:$0xff]  ;;  %vm39_vm0 = vcmask 523264  }
  0x1a   :  { %s47_s20 = sshll.u32 %s128_s19, 4  ;;  %v38_v2 = vadd.f32 %v37_v1, %v36_v0  ;;  %s48_s20 = int_to_ptr.vmem [resolvable:$true] %s47_s20 }
  0x1b   :  { %s100_s0 = scalar_lea.vmem %s48_s20, 128  ;;  %p105_p11 = scmp.lt.s32.totalorder %s48_s20, %s48_s20 }
  0x1c   :  { %40 = vst.msk [vmem:[#allocation7] sm:$0xff] %vm39_vm0, %v38_v2  ;;  %p101_p10 = scmp.ne.s32.totalorder %s48_s20, %s100_s0  ;;  %p106_p12 = scmp.lt.s32.totalorder %s100_s0, %s100_s0 }
  0x1e   :  { %p107_p13 = por %p106_p12, %p105_p11 }
  0x20   :  { %p108_p0 = pnand %p107_p13, %p101_p10 }
  0x22   :  { %111 = shalt.err (!%p108_p0)
}
  0x23   :  { %50 = dma.vmem_to_hbm [thread:$0]  %s48_s20, 128, %s155_s2, [#allocation4]  }
  0x24   :  { %124 = dma.done.wait [#allocation4], 128  }
  0x25   :  { %125 = vsyncadd [#allocation4], 4294967168 }
  0x26   :  { %54 = vsyncpa [#allocation3], 1 }
  0x27   :  { %55 = vsyncpa [#allocation6], 1 }
  0x28   :  { %56 = vsyncpa [#allocation4], 1 }

</bundles_post_ra>
